<compile_context>
chip_gen: v7x
topology: tpu7x:2x2x1
jax: 0.10.0
libtpu: 0.0.40
codegen_flags: <defaults>
</compile_context>

<pallas_src>
import jax
import jax.numpy as jnp
from jax.experimental import pallas as pl
from jax.experimental.pallas import tpu as pltpu


def gated_tanh_kernel(x_ref, w_ref, b_ref, o_ref):
    # x_ref: (1, TB)     -- batch slice along lanes
    # w_ref: (Fout, 1)   -- resident tiny parameter tile
    # b_ref: (Fout, 1)
    # o_ref: (Fout, TB)  -- lane-dense output slab
    x_row = x_ref[...]                      # (1, TB)
    w = w_ref[...]                          # (Fout, 1)
    b = b_ref[...]                          # (Fout, 1)
    # Outer-product FMA on the VPU (no MXU round trip for a K=1 contraction).
    y = w * x_row + b                       # (Fout, TB), f32
    # SiLU: x1 * sigmoid(x1).  exp lands on the EUP slot (free alongside VALU).
    o_ref[...] = (y * jax.nn.sigmoid(y)).astype(o_ref.dtype)


def gated_tanh(x, weight, bias, *, tb=512):
    """x: (B, 1); weight: (Fout, 1); bias: (Fout,) -> (B, Fout).

    Matches torch.nn.Linear(1, Fout) followed by y * sigmoid(y).
    """
    B, Fin = x.shape
    assert Fin == 1, "this kernel is specialized to in_features == 1"
    Fout = weight.shape[0]

    # Batch tile: multiple of 128 so the lane axis is fully dense.
    TB = min(tb, pl.next_power_of_2(max(B, 128)))
    B_pad = pl.cdiv(B, TB) * TB

    # Transposed, lane-dense layouts (wrapper-side plumbing, not compute).
    x_t = x.reshape(1, B).astype(jnp.float32)          # (1, B)
    if B_pad != B:
        x_t = jnp.pad(x_t, ((0, 0), (0, B_pad - B)))   # (1, B_pad)
    w2d = weight.reshape(Fout, 1).astype(jnp.float32)  # (Fout, 1)
    b2d = bias.reshape(Fout, 1).astype(jnp.float32)    # (Fout, 1)

    out_t = pl.pallas_call(
        gated_tanh_kernel,
        out_shape=jax.ShapeDtypeStruct((Fout, B_pad), jnp.float32),
        grid_spec=pltpu.PrefetchScalarGridSpec(
            num_scalar_prefetch=0,
            grid=(B_pad // TB,),
            in_specs=[
                pl.BlockSpec((1, TB), lambda i: (0, i)),        # x slice
                pl.BlockSpec((Fout, 1), lambda i: (0, 0)),      # weight (resident)
                pl.BlockSpec((Fout, 1), lambda i: (0, 0)),      # bias   (resident)
            ],
            out_specs=pl.BlockSpec((Fout, TB), lambda i: (0, i)),
        ),
        compiler_params=pltpu.CompilerParams(
            dimension_semantics=("parallel",),
        ),
    )(x_t, w2d, b2d)

    # Back to PyTorch convention (B, Fout); drop batch padding.
    return out_t[:, :B].T.astype(x.dtype)


if __name__ == "__main__":
    key = jax.random.PRNGKey(0)
    k_x, k_w, k_b = jax.random.split(key, 3)

    B, Fin, Fout = 2, 1, 8

    # Deterministic parameter init (PyTorch-Linear-style uniform bound = 1/sqrt(Fin)).
    bound = 1.0 / (Fin ** 0.5)
    x = jax.random.normal(k_x, (B, Fin), dtype=jnp.float32)
    weight = jax.random.uniform(k_w, (Fout, Fin), jnp.float32, -bound, bound)
    bias = jax.random.uniform(k_b, (Fout,), jnp.float32, -bound, bound)

    out = gated_tanh(x, weight, bias)
    jax.block_until_ready(out)

    # Reference check in plain JAX (same math as the PyTorch forward).
    y_ref = x @ weight.T + bias
    ref = y_ref * jax.nn.sigmoid(y_ref)
    assert out.shape == (B, Fout), f"bad output shape {out.shape}"
    assert jnp.allclose(out, ref, atol=1e-5, rtol=1e-5), "mismatch vs reference"

    print("KERNEL_OK")
</pallas_src>

<mosaic_0001>
module attributes {stable_mosaic.version = 11 : i64} {
  func.func @gated_tanh_kernel(%arg0: i32, %arg1: memref<1x128xf32, #tpu.memory_space<vmem>>, %arg2: memref<8x1xf32, #tpu.memory_space<vmem>>, %arg3: memref<8x1xf32, #tpu.memory_space<vmem>>, %arg4: memref<8x128xf32, #tpu.memory_space<vmem>>) attributes {dimension_semantics = [#tpu.dimension_semantics<parallel>], iteration_bounds = array<i64: 1>, scalar_prefetch = 0 : i64, scratch_operands = 0 : i64, tpu.core_type = #tpu.core_type<tc>, window_params = [{transform_indices = @transform_0, window_bounds = array<i64: 1, 128>}, {pipeline_mode = #tpu.pipeline_mode<synchronous>, transform_indices = @transform_1, window_bounds = array<i64: 8, 1>}, {pipeline_mode = #tpu.pipeline_mode<synchronous>, transform_indices = @transform_2, window_bounds = array<i64: 8, 1>}, {transform_indices = @transform_3, window_bounds = array<i64: 8, 128>}]} {
    %c0 = arith.constant 0 : index
    %c0_0 = arith.constant 0 : index
    %0 = vector.load %arg1[%c0, %c0_0] : memref<1x128xf32, #tpu.memory_space<vmem>>, vector<1x128xf32>
    %c0_1 = arith.constant 0 : index
    %c0_2 = arith.constant 0 : index
    %1 = vector.load %arg2[%c0_1, %c0_2] : memref<8x1xf32, #tpu.memory_space<vmem>>, vector<8x1xf32>
    %c0_3 = arith.constant 0 : index
    %c0_4 = arith.constant 0 : index
    %2 = vector.load %arg3[%c0_3, %c0_4] : memref<8x1xf32, #tpu.memory_space<vmem>>, vector<8x1xf32>
    %3 = vector.broadcast %1 : vector<8x1xf32> to vector<8x128xf32>
    %4 = vector.broadcast %0 : vector<1x128xf32> to vector<8x128xf32>
    %5 = arith.mulf %3, %4 : vector<8x128xf32>
    %6 = vector.broadcast %2 : vector<8x1xf32> to vector<8x128xf32>
    %7 = arith.addf %5, %6 : vector<8x128xf32>
    %8 = arith.negf %7 : vector<8x128xf32>
    %9 = math.exp %8 : vector<8x128xf32>
    %cst = arith.constant 1.000000e+00 : f32
    %10 = vector.broadcast %cst : f32 to vector<8x128xf32>
    %11 = arith.addf %10, %9 : vector<8x128xf32>
    %12 = arith.divf %10, %11 : vector<8x128xf32>
    %13 = arith.mulf %7, %12 : vector<8x128xf32>
    %c0_5 = arith.constant 0 : index
    %c0_6 = arith.constant 0 : index
    %14 = vector.load %arg4[%c0_5, %c0_6] : memref<8x128xf32, #tpu.memory_space<vmem>>, vector<8x128xf32>
    tpu.vector_store %arg4[%c0_5, %c0_6], %13 {strides = array<i32>} : memref<8x128xf32, #tpu.memory_space<vmem>>, vector<8x128xf32>,
    return
  }
  func.func @transform_0(%arg0: i32) -> (i32, i32) {
    %c0_i32 = arith.constant 0 : i32
    %c0_i32_0 = arith.constant 0 : i32
    return %c0_i32, %arg0 : i32, i32
  }
  func.func @transform_1(%arg0: i32) -> (i32, i32) {
    %c0_i32 = arith.constant 0 : i32
    %c0_i32_0 = arith.constant 0 : i32
    %c0_i32_1 = arith.constant 0 : i32
    return %c0_i32, %c0_i32_0 : i32, i32
  }
  func.func @transform_2(%arg0: i32) -> (i32, i32) {
    %c0_i32 = arith.constant 0 : i32
    %c0_i32_0 = arith.constant 0 : i32
    %c0_i32_1 = arith.constant 0 : i32
    return %c0_i32, %c0_i32_0 : i32, i32
  }
  func.func @transform_3(%arg0: i32) -> (i32, i32) {
    %c0_i32 = arith.constant 0 : i32
    %c0_i32_0 = arith.constant 0 : i32
    return %c0_i32, %arg0 : i32, i32
  }
}

</mosaic_0001>

<bundles_post_ra>
// kernel: tpu_custom_call.1
= control target key start
LH: loop header
LB: loop body
LE: loop exit
PB: predicated region body
PF: predicated region fallthrough
CT: control target
= control target key end

     0   :  { %s134_s0 = inlined_call_operand.vmem [shape: f32[1,128], index: 0, kind: input, shape index: {}]   ;;  %s135_s1 = inlined_call_operand.vmem [shape: f32[8,1], index: 1, kind: input, shape index: {}]   ;;  %s136_s2 = inlined_call_operand.vmem [shape: f32[8,1], index: 2, kind: input, shape index: {}]   ;;  %s137_s3 = inlined_call_operand.hbm [shape: f32[8,128], index: 3, kind: output, shape index: {}]  }
   0x1   :  { %v16_v0 = vld [vmem:[%s135_s1] sm:$0xff] }
   0x2   :  { %8 = vsyncpa [#allocation3], 0  ;;  %v91_v1 = vmov 0   ;;  %v17_v2 = vld [vmem:[%s136_s2] sm:$0xff]  ;;  %s92_s1 = smov [#allocation2]  }
   0x3   :  { %62 = vset.pattern.permute.xlu0 %v91_v1  ;;  %v58_v4 = vld [vmem:[%s134_s0] ss:$0 sm:$0xff]  ;;  %s50_s18 = sshll.u32 %s92_s1, 4  ;;  %s51_s18 = int_to_ptr.vmem [resolvable:$true] %s50_s18 }
   0x4   :  { %20 = vperm.xlu0 %62, %v16_v0   ;;  %s67_s2 = scalar_lea.vmem %s51_s18, 128  ;;  %p72_p1 = scmp.lt.s32.totalorder %s51_s18, %s51_s18 }
   0x5   :  { %p68_p0 = scmp.ne.s32.totalorder %s51_s18, %s67_s2  ;;  %p73_p2 = scmp.lt.s32.totalorder %s67_s2, %s67_s2 }
   0x7   :  { %p74_p3 = por %p73_p2, %p72_p1 }
   0x8   :  { %32 = vperm.xlu0 %62, %v17_v2  }
   0x9   :  { %p75_p4 = pnand %p74_p3, %p68_p0 }
  0x83   :  { %v21_v3 = vpop.permute.xlu0 %20 }
  0x84   :  { %v29_v5 = vmul.f32 %v58_v4, %v21_v3 }
  0x87   :  { %v33_v6 = vpop.permute.xlu0 %32 }
  0x88   :  { %v35_v7 = vadd.f32 %v33_v6, %v29_v5 }
  0x8a   :  { %v59_v8 = vmul.f32 -1.442695, %v35_v7 }
  0x8c   :  { %63 = vpow2.f32 %v59_v8 }
  0x96   :  { %v64_v9 = vpop.eup %63 }
  0x97   :  { %v39_v10 = vadd.f32 1.0, %v64_v9 }
  0x99   :  { %65 = vrcp.f32 %v39_v10 }
  0xa3   :  { %v66_v11 = vpop.eup %65 }
  0xa4   :  { %v42_v12 = vmul.f32 %v66_v11, %v35_v7 }
  0xa6   :  { %43 = vst [vmem:[#allocation2] sm:$0xff] %v42_v12 }
  0xa7   :  { %78 = shalt.err (!%p75_p4)
}
  0xa8   :  { %s79_s20 = scalar_lea.hbm %s137_s3, 128 }
  0xa9   :  { %p80_p5 = scmp.ne.s32.totalorder %s137_s3, %s79_s20  ;;  %p83_p6 = scmp.lt.u32.totalorder %s79_s20, %s137_s3 }
  0xab   :  { %p85_p7 = pnand %p83_p6, %p80_p5 }
  0xad   :  { %88 = shalt.err (!%p85_p7)
}
  0xae   :  { %53 = dma.vmem_to_hbm [thread:$0]  %s51_s18, 128, %s137_s3, [#allocation3]  }
  0xaf   :  { %89 = dma.done.wait [#allocation3], 128  }
  0xb0   :  { %90 = vsyncadd [#allocation3], 4294967168 }
  0xb1   :  { %57 = vsyncpa [#allocation3], 1 }

</bundles_post_ra>
